<compile_context>
chip_gen: v7x
topology: tpu7x:2x2x1
jax: 0.10.0
libtpu: 0.0.40
codegen_flags: <defaults>
</compile_context>

<pallas_src>
import functools
import math

import jax
import jax.numpy as jnp
from jax.experimental import pallas as pl
from jax.experimental.pallas import tpu as pltpu


# ---------------------------------------------------------------------------
# Kernel
# ---------------------------------------------------------------------------
def _attention_kernel(x_ref, wqkv_ref, bqkv_ref, o_ref, *, hp, mxu_bf16):
    """One grid step = `block_b` batch elements.
    Q/K/V projections (3 MXU dots on static weight column views), QK^T (MXU),
    softmax (VPU/EUP), attn @ V (MXU)."""
    nb, s, _ = x_ref.shape
    dt = jnp.bfloat16 if mxu_bf16 else x_ref.dtype   # MXU operand dtype

    # (NB, S, Hp) -> (NB*S, Hp).  Layout-preserving: Hp is lane-aligned and
    # S is a multiple of the sublane tile for f32; for bf16 callers use
    # mxu_bf16 path only when S % 16 == 0 (see wrapper assert).
    x2 = x_ref[...].reshape(nb * s, hp).astype(dt)

    def proj(lo, hi):
        # Static, lane-aligned column view of the fused weight -- no big
        # (NB*S, 3Hp) f32 intermediate and no post-hoc slice copies.
        w = wqkv_ref[:, lo:hi].astype(dt)
        y = jnp.dot(x2, w, preferred_element_type=jnp.float32)
        return (y + bqkv_ref[:, lo:hi]).reshape(nb, s, hp)

    q = proj(0, hp)            # 1/sqrt(H) pre-folded into W_q / b_q (wrapper)
    k = proj(hp, 2 * hp)
    v = proj(2 * hp, 3 * hp)

    # scores = Q_scaled @ K^T : contract H on both sides (no XLU transpose).
    scores = jnp.einsum("bqh,bkh->bqk", q.astype(dt), k.astype(dt),
                        preferred_element_type=jnp.float32)   # (NB, S, S)

    # Numerically-stable softmax along the last dim (f32).
    scores = scores - jnp.max(scores, axis=-1, keepdims=True)
    p = jnp.exp(scores)
    denom = jnp.sum(p, axis=-1, keepdims=True)
    r = pl.reciprocal(denom, approx=True)     # EUP slot (otherwise idle)
    r = r * (2.0 - denom * r)                 # one Newton step -> ~exact f32
    p = p * r

    # context = attn @ V
    ctx = jnp.einsum("bqk,bkh->bqh", p.astype(dt), v.astype(dt),
                     preferred_element_type=jnp.float32)      # (NB, S, Hp)
    o_ref[...] = ctx.astype(o_ref.dtype)


# ---------------------------------------------------------------------------
# Chip detection & VMEM-budget-driven block sizing
# ---------------------------------------------------------------------------
def _chip_info():
    """Return (vmem_capacity_bytes, two_tensorcores_per_device)."""
    kind = ""
    try:
        kind = jax.devices()[0].device_kind.lower()
    except Exception:
        pass
    vmem_cap = None
    try:
        vmem_cap = int(pltpu.get_tpu_info().vmem_capacity_bytes)
    except Exception:
        vmem_cap = None
    if not vmem_cap:
        vmem_cap = (64 << 20) if ("v7" in kind or "7x" in kind) else (128 << 20)
    # Chips with 2 TensorCores behind one Pallas device need >= 2 grid steps
    # for dimension_semantics=("parallel",) to shard across both cores.
    two_cores = any(tag in kind for tag in ("v4", "v5p", "v7", "7x"))
    return vmem_cap, two_cores


def _vmem_bytes_for_block(block_b, s, hp, itemsize, weight_bufs):
    """Estimated per-step VMEM footprint including in-kernel f32 temporaries."""
    f32 = 4
    xo_blocks = 2 * 2 * block_b * s * hp * itemsize          # x + out, double-buffered
    weights = weight_bufs * (hp * 3 * hp + 8 * 3 * hp) * itemsize
    qkv = 3 * block_b * s * hp * f32                          # q, k, v (f32)
    scores = 2 * block_b * s * s * f32                        # scores + p (f32)
    ctx = block_b * s * hp * f32
    return int(1.25 * (xo_blocks + weights + qkv + scores + ctx))  # 25% slop


def _pick_block_b(batch, s, hp, itemsize, budget_bytes, need_two_steps):
    """Largest divisor of `batch` whose estimated VMEM fits the budget; keep
    >= 2 grid steps only when the chip has 2 TensorCores per device."""
    best = 1
    for cand in range(1, batch + 1):
        if batch % cand:
            continue
        if need_two_steps and batch >= 2 and batch // cand < 2:
            continue
        if _vmem_bytes_for_block(cand, s, hp, itemsize, weight_bufs=1) > budget_bytes:
            continue
        best = cand
    return best


# ---------------------------------------------------------------------------
# Wrapper
# ---------------------------------------------------------------------------
def attention_forward(x, wq, wk, wv, bq, bk, bv, *, block_b=None,
                      mxu_bf16=False, unpad=True):
    """x: (B, S, H); wq/wk/wv: (H, H) laid out as (in, out); bq/bk/bv: (H,)."""
    B, S, H = x.shape
    Hp = ((H + 127) // 128) * 128            # lane-dense hidden dim
    pad = Hp - H
    inv_scale = 1.0 / math.sqrt(float(H))    # PyTorch scale uses original H

    if mxu_bf16:
        # bf16 packs 16 rows per sublane tile; the in-kernel reshape must not
        # break the (16, 128) tiling.
        assert S % 16 == 0, "mxu_bf16 path requires S to be a multiple of 16"

    # One-time parameter transform (would be done at load time in a model):
    # fold 1/sqrt(H) into the Q projection, zero-pad to lane width, fuse QKV.
    wq_s = wq * inv_scale
    bq_s = bq * inv_scale
    if pad:
        x_p = jnp.pad(x, ((0, 0), (0, 0), (0, pad)))
        wq_p, wk_p, wv_p = (jnp.pad(w, ((0, pad), (0, pad)))
                            for w in (wq_s, wk, wv))
        bq_p, bk_p, bv_p = (jnp.pad(b, ((0, pad),)) for b in (bq_s, bk, bv))
    else:
        x_p, wq_p, wk_p, wv_p, bq_p, bk_p, bv_p = x, wq_s, wk, wv, bq_s, bk, bv

    wqkv = jnp.concatenate([wq_p, wk_p, wv_p], axis=1)             # (Hp, 3*Hp)
    bqkv = jnp.concatenate([bq_p, bk_p, bv_p]).reshape(1, 3 * Hp)  # (1, 3*Hp)

    itemsize = jnp.dtype(x.dtype).itemsize
    vmem_cap, two_cores = _chip_info()
    budget = int(0.40 * vmem_cap)            # ~51 MiB v5e/v6e, ~25 MiB v7x
    if block_b is None:
        block_b = _pick_block_b(B, S, Hp, itemsize, budget, two_cores)
    assert B % block_b == 0

    est = _vmem_bytes_for_block(block_b, S, Hp, itemsize, weight_bufs=1)
    vmem_limit = int(min(0.9 * vmem_cap, max(2 * est, 32 << 20)))

    kernel = functools.partial(_attention_kernel, hp=Hp, mxu_bf16=mxu_bf16)

    cost = pl.CostEstimate(
        flops=2 * B * S * Hp * (3 * Hp) + 2 * 2 * B * S * S * Hp,
        transcendentals=B * S * S + B * S,
        bytes_accessed=(x_p.size + wqkv.size + bqkv.size + B * S * Hp) * itemsize,
    )

    def call(single_buffer_weights):
        if single_buffer_weights:
            # Grid-invariant weight/bias: single buffer, never re-fetched.
            w_spec = pl.BlockSpec((Hp, 3 * Hp), lambda b: (0, 0),
                                  pipeline_mode=pl.Buffered(1))
            b_spec = pl.BlockSpec((1, 3 * Hp), lambda b: (0, 0),
                                  pipeline_mode=pl.Buffered(1))
        else:
            w_spec = pl.BlockSpec((Hp, 3 * Hp), lambda b: (0, 0))
            b_spec = pl.BlockSpec((1, 3 * Hp), lambda b: (0, 0))
        return pl.pallas_call(
            kernel,
            out_shape=jax.ShapeDtypeStruct((B, S, Hp), x.dtype),
            grid_spec=pltpu.PrefetchScalarGridSpec(
                num_scalar_prefetch=0,
                grid=(B // block_b,),
                in_specs=[
                    pl.BlockSpec((block_b, S, Hp), lambda b: (b, 0, 0)),   # x
                    w_spec,                                                # Wqkv
                    b_spec,                                                # bqkv
                ],
                out_specs=pl.BlockSpec((block_b, S, Hp), lambda b: (b, 0, 0)),
            ),
            compiler_params=pltpu.CompilerParams(
                dimension_semantics=("parallel",),
                vmem_limit_bytes=vmem_limit),
            cost_estimate=cost,
        )(x_p, wqkv, bqkv)

    try:
        out = call(True)       # single-buffered grid-invariant weights
    except Exception:
        out = call(False)      # conservative fallback: default double-buffering

    # Un-padding is optional: downstream consumers that accept the lane-dense
    # Hp layout should take the padded slab to avoid an extra HBM round trip.
    if pad and unpad:
        out = out[..., :H]
    return out


# ---------------------------------------------------------------------------
# Pure-JAX reference mirroring the PyTorch forward
# ---------------------------------------------------------------------------
def _reference(x, wq, wk, wv, bq, bk, bv):
    H = x.shape[-1]
    q = x @ wq + bq
    k = x @ wk + bk
    v = x @ wv + bv
    s = jnp.einsum("bqh,bkh->bqk", q, k) / jnp.sqrt(jnp.float32(H))
    p = jax.nn.softmax(s, axis=-1)
    return jnp.einsum("bqk,bkh->bqh", p, v)


if __name__ == "__main__":
    B, S, H = 2, 8, 32

    key = jax.random.PRNGKey(0)
    kx, kwq, kwk, kwv, kbq, kbk, kbv = jax.random.split(key, 7)

    # Deterministic parameter init (PyTorch nn.Linear-style uniform bound).
    bound = 1.0 / math.sqrt(float(H))
    x = jax.random.normal(kx, (B, S, H), dtype=jnp.float32)
    # Stored as (H_in, H_out): equivalent to PyTorch weight.T
    wq = jax.random.uniform(kwq, (H, H), jnp.float32, -bound, bound)
    wk = jax.random.uniform(kwk, (H, H), jnp.float32, -bound, bound)
    wv = jax.random.uniform(kwv, (H, H), jnp.float32, -bound, bound)
    bq = jax.random.uniform(kbq, (H,), jnp.float32, -bound, bound)
    bk = jax.random.uniform(kbk, (H,), jnp.float32, -bound, bound)
    bv = jax.random.uniform(kbv, (H,), jnp.float32, -bound, bound)

    out = attention_forward(x, wq, wk, wv, bq, bk, bv)
    out = jax.block_until_ready(out)

    ref = _reference(x, wq, wk, wv, bq, bk, bv)
    assert out.shape == (B, S, H)
    assert jnp.allclose(out, ref, atol=1e-4, rtol=1e-4), (
        f"max abs err {jnp.max(jnp.abs(out - ref))}")

    print("KERNEL_OK")
</pallas_src>

<mosaic_0001>
module attributes {stable_mosaic.version = 11 : i64} {
  func.func @_attention_kernel(%arg0: i32, %arg1: memref<2x8x128xf32, #tpu.memory_space<vmem>>, %arg2: memref<128x384xf32, #tpu.memory_space<vmem>>, %arg3: memref<1x384xf32, #tpu.memory_space<vmem>>, %arg4: memref<2x8x128xf32, #tpu.memory_space<vmem>>) attributes {dimension_semantics = [#tpu.dimension_semantics<parallel>], iteration_bounds = array<i64: 1>, scalar_prefetch = 0 : i64, scratch_operands = 0 : i64, tpu.core_type = #tpu.core_type<tc>, window_params = [{transform_indices = @transform_0, window_bounds = array<i64: 2, 8, 128>}, {pipeline_mode = #tpu.pipeline_mode<synchronous>, transform_indices = @transform_1, window_bounds = array<i64: 128, 384>}, {pipeline_mode = #tpu.pipeline_mode<synchronous>, transform_indices = @transform_2, window_bounds = array<i64: 1, 384>}, {transform_indices = @transform_3, window_bounds = array<i64: 2, 8, 128>}]} {
    %c0 = arith.constant 0 : index
    %c0_0 = arith.constant 0 : index
    %c0_1 = arith.constant 0 : index
    %0 = vector.load %arg1[%c0, %c0_0, %c0_1] : memref<2x8x128xf32, #tpu.memory_space<vmem>>, vector<2x8x128xf32>
    %1 = vector.shape_cast %0 : vector<2x8x128xf32> to vector<16x128xf32>
    %c0_2 = arith.constant 0 : index
    %c0_3 = arith.constant 0 : index
    %2 = vector.load %arg2[%c0_2, %c0_3] : memref<128x384xf32, #tpu.memory_space<vmem>>, vector<128x128xf32>
    %cst = arith.constant dense<0.000000e+00> : vector<16x128xf32>
    %3 = tpu.matmul %1, %2, %cst {dimension_numbers = #tpu.dot_dimension_numbers<[1], [0], [0], [1], [0, 0, 1, 1], [], []>} : vector<16x128xf32>, vector<128x128xf32>, vector<16x128xf32> -> vector<16x128xf32>
    %c0_4 = arith.constant 0 : index
    %c0_5 = arith.constant 0 : index
    %4 = vector.load %arg3[%c0_4, %c0_5] : memref<1x384xf32, #tpu.memory_space<vmem>>, vector<1x128xf32>
    %5 = vector.broadcast %4 : vector<1x128xf32> to vector<16x128xf32>
    %6 = arith.addf %3, %5 : vector<16x128xf32>
    %7 = vector.shape_cast %6 : vector<16x128xf32> to vector<2x8x128xf32>
    %c0_6 = arith.constant 0 : index
    %c128 = arith.constant 128 : index
    %8 = vector.load %arg2[%c0_6, %c128] : memref<128x384xf32, #tpu.memory_space<vmem>>, vector<128x128xf32>
    %cst_7 = arith.constant dense<0.000000e+00> : vector<16x128xf32>
    %9 = tpu.matmul %1, %8, %cst_7 {dimension_numbers = #tpu.dot_dimension_numbers<[1], [0], [0], [1], [0, 0, 1, 1], [], []>} : vector<16x128xf32>, vector<128x128xf32>, vector<16x128xf32> -> vector<16x128xf32>
    %c0_8 = arith.constant 0 : index
    %c128_9 = arith.constant 128 : index
    %10 = vector.load %arg3[%c0_8, %c128_9] : memref<1x384xf32, #tpu.memory_space<vmem>>, vector<1x128xf32>
    %11 = vector.broadcast %10 : vector<1x128xf32> to vector<16x128xf32>
    %12 = arith.addf %9, %11 : vector<16x128xf32>
    %13 = vector.shape_cast %12 : vector<16x128xf32> to vector<2x8x128xf32>
    %c0_10 = arith.constant 0 : index
    %c256 = arith.constant 256 : index
    %14 = vector.load %arg2[%c0_10, %c256] : memref<128x384xf32, #tpu.memory_space<vmem>>, vector<128x128xf32>
    %cst_11 = arith.constant dense<0.000000e+00> : vector<16x128xf32>
    %15 = tpu.matmul %1, %14, %cst_11 {dimension_numbers = #tpu.dot_dimension_numbers<[1], [0], [0], [1], [0, 0, 1, 1], [], []>} : vector<16x128xf32>, vector<128x128xf32>, vector<16x128xf32> -> vector<16x128xf32>
    %c0_12 = arith.constant 0 : index
    %c256_13 = arith.constant 256 : index
    %16 = vector.load %arg3[%c0_12, %c256_13] : memref<1x384xf32, #tpu.memory_space<vmem>>, vector<1x128xf32>
    %17 = vector.broadcast %16 : vector<1x128xf32> to vector<16x128xf32>
    %18 = arith.addf %15, %17 : vector<16x128xf32>
    %19 = vector.shape_cast %18 : vector<16x128xf32> to vector<2x8x128xf32>
    "tpu.trace_start"() <{level = 10 : i32, message = "bqh,bkh->bqk"}> : () -> ()
    %cst_14 = arith.constant dense<0.000000e+00> : vector<2x8x8xf32>
    %20 = tpu.matmul %7, %13, %cst_14 {dimension_numbers = #tpu.dot_dimension_numbers<[2], [2], [1], [1], [0, 0, 0, 1, 1, 1], [0], [0]>} : vector<2x8x128xf32>, vector<2x8x128xf32>, vector<2x8x8xf32> -> vector<2x8x8xf32>
    "tpu.trace_stop"() : () -> ()
    %cst_15 = arith.constant dense<0xFF800000> : vector<2x8xf32>
    %21 = vector.multi_reduction <maximumf>, %20, %cst_15 [2] : vector<2x8x8xf32> to vector<2x8xf32>
    %22 = vector.shape_cast %21 : vector<2x8xf32> to vector<2x8x1xf32>
    %23 = vector.broadcast %22 : vector<2x8x1xf32> to vector<2x8x8xf32>
    %24 = arith.subf %20, %23 : vector<2x8x8xf32>
    %25 = math.exp %24 : vector<2x8x8xf32>
    %cst_16 = arith.constant dense<0.000000e+00> : vector<2x8xf32>
    %26 = vector.multi_reduction <add>, %25, %cst_16 [2] : vector<2x8x8xf32> to vector<2x8xf32>
    %27 = vector.shape_cast %26 : vector<2x8xf32> to vector<2x8x1xf32>
    %28 = tpu.reciprocal %27 {approx = true} : vector<2x8x1xf32> -> vector<2x8x1xf32>
    %29 = arith.mulf %27, %28 : vector<2x8x1xf32>
    %cst_17 = arith.constant 2.000000e+00 : f32
    %30 = vector.broadcast %cst_17 : f32 to vector<2x8x1xf32>
    %31 = arith.subf %30, %29 : vector<2x8x1xf32>
    %32 = arith.mulf %28, %31 : vector<2x8x1xf32>
    %33 = vector.broadcast %32 : vector<2x8x1xf32> to vector<2x8x8xf32>
    %34 = arith.mulf %25, %33 : vector<2x8x8xf32>
    "tpu.trace_start"() <{level = 10 : i32, message = "bqk,bkh->bqh"}> : () -> ()
    %cst_18 = arith.constant dense<0.000000e+00> : vector<2x8x128xf32>
    %35 = tpu.matmul %34, %19, %cst_18 {dimension_numbers = #tpu.dot_dimension_numbers<[2], [1], [1], [2], [0, 0, 0, 1, 1, 2], [0], [0]>} : vector<2x8x8xf32>, vector<2x8x128xf32>, vector<2x8x128xf32> -> vector<2x8x128xf32>
    "tpu.trace_stop"() : () -> ()
    %c0_19 = arith.constant 0 : index
    %c0_20 = arith.constant 0 : index
    %c0_21 = arith.constant 0 : index
    %36 = vector.load %arg4[%c0_19, %c0_20, %c0_21] : memref<2x8x128xf32, #tpu.memory_space<vmem>>, vector<2x8x128xf32>
    tpu.vector_store %arg4[%c0_19, %c0_20, %c0_21], %35 {strides = array<i32>} : memref<2x8x128xf32, #tpu.memory_space<vmem>>, vector<2x8x128xf32>,
    return
  }
  func.func @transform_0(%arg0: i32) -> (i32, i32, i32) {
    %c0_i32 = arith.constant 0 : i32
    %c0_i32_0 = arith.constant 0 : i32
    %c0_i32_1 = arith.constant 0 : i32
    return %arg0, %c0_i32, %c0_i32_0 : i32, i32, i32
  }
  func.func @transform_1(%arg0: i32) -> (i32, i32) {
    %c0_i32 = arith.constant 0 : i32
    %c0_i32_0 = arith.constant 0 : i32
    %c0_i32_1 = arith.constant 0 : i32
    return %c0_i32, %c0_i32_0 : i32, i32
  }
  func.func @transform_2(%arg0: i32) -> (i32, i32) {
    %c0_i32 = arith.constant 0 : i32
    %c0_i32_0 = arith.constant 0 : i32
    %c0_i32_1 = arith.constant 0 : i32
    return %c0_i32, %c0_i32_0 : i32, i32
  }
  func.func @transform_3(%arg0: i32) -> (i32, i32, i32) {
    %c0_i32 = arith.constant 0 : i32
    %c0_i32_0 = arith.constant 0 : i32
    %c0_i32_1 = arith.constant 0 : i32
    return %arg0, %c0_i32, %c0_i32_0 : i32, i32, i32
  }
}

module attributes {stable_mosaic.version = 11 : i64} {
  func.func @_attention_kernel(%arg0: i32, %arg1: memref<2x8x128xf32, #tpu.memory_space<vmem>>, %arg2: memref<128x384xf32, #tpu.memory_space<vmem>>, %arg3: memref<1x384xf32, #tpu.memory_space<vmem>>, %arg4: memref<2x8x128xf32, #tpu.memory_space<vmem>>) attributes {dimension_semantics = [#tpu.dimension_semantics<parallel>], iteration_bounds = array<i64: 1>, scalar_prefetch = 0 : i64, scratch_operands = 0 : i64, tpu.core_type = #tpu.core_type<tc>, window_params = [{transform_indices = @transform_0, window_bounds = array<i64: 2, 8, 128>}, {pipeline_mode = #tpu.pipeline_mode<synchronous>, transform_indices = @transform_1, window_bounds = array<i64: 128, 384>}, {pipeline_mode = #tpu.pipeline_mode<synchronous>, transform_indices = @transform_2, window_bounds = array<i64: 1, 384>}, {transform_indices = @transform_3, window_bounds = array<i64: 2, 8, 128>}]} {
    %c0 = arith.constant 0 : index
    %c0_0 = arith.constant 0 : index
    %c0_1 = arith.constant 0 : index
    %0 = vector.load %arg1[%c0, %c0_0, %c0_1] : memref<2x8x128xf32, #tpu.memory_space<vmem>>, vector<2x8x128xf32>
    %1 = vector.shape_cast %0 : vector<2x8x128xf32> to vector<16x128xf32>
    %c0_2 = arith.constant 0 : index
    %c0_3 = arith.constant 0 : index
    %2 = vector.load %arg2[%c0_2, %c0_3] : memref<128x384xf32, #tpu.memory_space<vmem>>, vector<128x128xf32>
    %cst = arith.constant dense<0.000000e+00> : vector<16x128xf32>
    %3 = tpu.matmul %1, %2, %cst {dimension_numbers = #tpu.dot_dimension_numbers<[1], [0], [0], [1], [0, 0, 1, 1], [], []>} : vector<16x128xf32>, vector<128x128xf32>, vector<16x128xf32> -> vector<16x128xf32>
    %c0_4 = arith.constant 0 : index
    %c0_5 = arith.constant 0 : index
    %4 = vector.load %arg3[%c0_4, %c0_5] : memref<1x384xf32, #tpu.memory_space<vmem>>, vector<1x128xf32>
    %5 = vector.broadcast %4 : vector<1x128xf32> to vector<16x128xf32>
    %6 = arith.addf %3, %5 : vector<16x128xf32>
    %7 = vector.shape_cast %6 : vector<16x128xf32> to vector<2x8x128xf32>
    %c0_6 = arith.constant 0 : index
    %c128 = arith.constant 128 : index
    %8 = vector.load %arg2[%c0_6, %c128] : memref<128x384xf32, #tpu.memory_space<vmem>>, vector<128x128xf32>
    %cst_7 = arith.constant dense<0.000000e+00> : vector<16x128xf32>
    %9 = tpu.matmul %1, %8, %cst_7 {dimension_numbers = #tpu.dot_dimension_numbers<[1], [0], [0], [1], [0, 0, 1, 1], [], []>} : vector<16x128xf32>, vector<128x128xf32>, vector<16x128xf32> -> vector<16x128xf32>
    %c0_8 = arith.constant 0 : index
    %c128_9 = arith.constant 128 : index
    %10 = vector.load %arg3[%c0_8, %c128_9] : memref<1x384xf32, #tpu.memory_space<vmem>>, vector<1x128xf32>
    %11 = vector.broadcast %10 : vector<1x128xf32> to vector<16x128xf32>
    %12 = arith.addf %9, %11 : vector<16x128xf32>
    %13 = vector.shape_cast %12 : vector<16x128xf32> to vector<2x8x128xf32>
    %c0_10 = arith.constant 0 : index
    %c256 = arith.constant 256 : index
    %14 = vector.load %arg2[%c0_10, %c256] : memref<128x384xf32, #tpu.memory_space<vmem>>, vector<128x128xf32>
    %cst_11 = arith.constant dense<0.000000e+00> : vector<16x128xf32>
    %15 = tpu.matmul %1, %14, %cst_11 {dimension_numbers = #tpu.dot_dimension_numbers<[1], [0], [0], [1], [0, 0, 1, 1], [], []>} : vector<16x128xf32>, vector<128x128xf32>, vector<16x128xf32> -> vector<16x128xf32>
    %c0_12 = arith.constant 0 : index
    %c256_13 = arith.constant 256 : index
    %16 = vector.load %arg3[%c0_12, %c256_13] : memref<1x384xf32, #tpu.memory_space<vmem>>, vector<1x128xf32>
    %17 = vector.broadcast %16 : vector<1x128xf32> to vector<16x128xf32>
    %18 = arith.addf %15, %17 : vector<16x128xf32>
    %19 = vector.shape_cast %18 : vector<16x128xf32> to vector<2x8x128xf32>
    "tpu.trace_start"() <{level = 10 : i32, message = "bqh,bkh->bqk"}> : () -> ()
    %cst_14 = arith.constant dense<0.000000e+00> : vector<2x8x8xf32>
    %20 = tpu.matmul %7, %13, %cst_14 {dimension_numbers = #tpu.dot_dimension_numbers<[2], [2], [1], [1], [0, 0, 0, 1, 1, 1], [0], [0]>} : vector<2x8x128xf32>, vector<2x8x128xf32>, vector<2x8x8xf32> -> vector<2x8x8xf32>
    "tpu.trace_stop"() : () -> ()
    %cst_15 = arith.constant dense<0xFF800000> : vector<2x8xf32>
    %21 = vector.multi_reduction <maximumf>, %20, %cst_15 [2] : vector<2x8x8xf32> to vector<2x8xf32>
    %22 = vector.shape_cast %21 : vector<2x8xf32> to vector<2x8x1xf32>
    %23 = vector.broadcast %22 : vector<2x8x1xf32> to vector<2x8x8xf32>
    %24 = arith.subf %20, %23 : vector<2x8x8xf32>
    %25 = math.exp %24 : vector<2x8x8xf32>
    %cst_16 = arith.constant dense<0.000000e+00> : vector<2x8xf32>
    %26 = vector.multi_reduction <add>, %25, %cst_16 [2] : vector<2x8x8xf32> to vector<2x8xf32>
    %27 = vector.shape_cast %26 : vector<2x8xf32> to vector<2x8x1xf32>
    %28 = tpu.reciprocal %27 {approx = true} : vector<2x8x1xf32> -> vector<2x8x1xf32>
    %29 = arith.mulf %27, %28 : vector<2x8x1xf32>
    %cst_17 = arith.constant 2.000000e+00 : f32
    %30 = vector.broadcast %cst_17 : f32 to vector<2x8x1xf32>
    %31 = arith.subf %30, %29 : vector<2x8x1xf32>
    %32 = arith.mulf %28, %31 : vector<2x8x1xf32>
    %33 = vector.broadcast %32 : vector<2x8x1xf32> to vector<2x8x8xf32>
    %34 = arith.mulf %25, %33 : vector<2x8x8xf32>
    "tpu.trace_start"() <{level = 10 : i32, message = "bqk,bkh->bqh"}> : () -> ()
    %cst_18 = arith.constant dense<0.000000e+00> : vector<2x8x128xf32>
    %35 = tpu.matmul %34, %19, %cst_18 {dimension_numbers = #tpu.dot_dimension_numbers<[2], [1], [1], [2], [0, 0, 0, 1, 1, 2], [0], [0]>} : vector<2x8x8xf32>, vector<2x8x128xf32>, vector<2x8x128xf32> -> vector<2x8x128xf32>
    "tpu.trace_stop"() : () -> ()
    %c0_19 = arith.constant 0 : index
    %c0_20 = arith.constant 0 : index
    %c0_21 = arith.constant 0 : index
    %36 = vector.load %arg4[%c0_19, %c0_20, %c0_21] : memref<2x8x128xf32, #tpu.memory_space<vmem>>, vector<2x8x128xf32>
    tpu.vector_store %arg4[%c0_19, %c0_20, %c0_21], %35 {strides = array<i32>} : memref<2x8x128xf32, #tpu.memory_space<vmem>>, vector<2x8x128xf32>,
    return
  }
  func.func @transform_0(%arg0: i32) -> (i32, i32, i32) {
    %c0_i32 = arith.constant 0 : i32
    %c0_i32_0 = arith.constant 0 : i32
    %c0_i32_1 = arith.constant 0 : i32
    return %arg0, %c0_i32, %c0_i32_0 : i32, i32, i32
  }
  func.func @transform_1(%arg0: i32) -> (i32, i32) {
    %c0_i32 = arith.constant 0 : i32
    %c0_i32_0 = arith.constant 0 : i32
    %c0_i32_1 = arith.constant 0 : i32
    return %c0_i32, %c0_i32_0 : i32, i32
  }
  func.func @transform_2(%arg0: i32) -> (i32, i32) {
    %c0_i32 = arith.constant 0 : i32
    %c0_i32_0 = arith.constant 0 : i32
    %c0_i32_1 = arith.constant 0 : i32
    return %c0_i32, %c0_i32_0 : i32, i32
  }
  func.func @transform_3(%arg0: i32) -> (i32, i32, i32) {
    %c0_i32 = arith.constant 0 : i32
    %c0_i32_0 = arith.constant 0 : i32
    %c0_i32_1 = arith.constant 0 : i32
    return %arg0, %c0_i32, %c0_i32_0 : i32, i32, i32
  }
}

</mosaic_0001>

<bundles_post_ra>
// kernel: tpu_custom_call.1
= control target key start
LH: loop header
LB: loop body
LE: loop exit
PB: predicated region body
PF: predicated region fallthrough
CT: control target
= control target key end

     0   :  { %8 = vsyncpa [#allocation3], 0  ;;  %s1154_s0 = inlined_call_operand.hbm [shape: f32[2,8,128], index: 0, kind: input, shape index: {}]   ;;  %s1155_s1 = inlined_call_operand.hbm [shape: f32[128,384], index: 1, kind: input, shape index: {}]   ;;  %s1156_s2 = inlined_call_operand.vmem [shape: f32[1,384], index: 2, kind: input, shape index: {}]   ;;  %s1157_s3 = inlined_call_operand.hbm [shape: f32[2,8,128], index: 3, kind: output, shape index: {}]  }
   0x1   :  { %9 = vsyncpa [#allocation6], 0 }
   0x2   :  { %10 = vsyncpa [#allocation4], 0  ;;  %s1051_s12 = smov [#allocation2]   ;;  %s979_s16 = scalar_lea.hbm %s1154_s0, 256 }
   0x3   :  { %s16_s13 = sshll.u32 %s1051_s12, 4  ;;  %p980_p0 = scmp.ne.s32.totalorder %s1154_s0, %s979_s16  ;;  %s17_s13 = int_to_ptr.vmem [resolvable:$true] %s16_s13 }
   0x4   :  { %p983_p1 = scmp.lt.u32.totalorder %s979_s16, %s1154_s0 }
   0x6   :  { %p985_p2 = pnand %p983_p1, %p980_p0 }
   0x8   :  { %988 = shalt.err (!%p985_p2)
}
   0x9   :  { %s989_s21 = scalar_lea.vmem %s17_s13, 256  ;;  %p994_p4 = scmp.lt.s32.totalorder %s17_s13, %s17_s13 }
   0xa   :  { %p990_p3 = scmp.ne.s32.totalorder %s17_s13, %s989_s21  ;;  %p995_p5 = scmp.lt.s32.totalorder %s989_s21, %s989_s21 }
   0xc   :  { %p996_p6 = por %p995_p5, %p994_p4 }
   0xe   :  { %p997_p7 = pnand %p996_p6, %p990_p3 }
  0x10   :  { %1000 = shalt.err (!%p997_p7)
}
  0x11   :  { %s1052_s22 = smov 128   ;;  %s1053_s23 = smov 8  }
  0x12   :  { %22 = dma.hbm_to_vmem [thread:$0]  %s1154_s0, 256, %s17_s13, [#allocation3], %s1052_s22, %s1052_s22, %s1053_s23  }
  0x13   :  { %s1054_s26 = smov [#allocation5]   ;;  %s1001_s30 = scalar_lea.hbm %s1155_s1, 6144 }
  0x14   :  { %s28_s27 = sshll.u32 %s1054_s26, 4  ;;  %p1002_p8 = scmp.ne.s32.totalorder %s1155_s1, %s1001_s30  ;;  %s29_s27 = int_to_ptr.vmem [resolvable:$true] %s28_s27 }
  0x15   :  { %p1005_p9 = scmp.lt.u32.totalorder %s1001_s30, %s1155_s1 }
  0x17   :  { %p1007_p10 = pnand %p1005_p9, %p1002_p8 }
  0x19   :  { %1010 = shalt.err (!%p1007_p10)
}
  0x1a   :  { %s1011_s8 = scalar_lea.vmem %s29_s27, 6144  ;;  %p1016_p12 = scmp.lt.s32.totalorder %s29_s27, %s29_s27 }
  0x1b   :  { %p1012_p11 = scmp.ne.s32.totalorder %s29_s27, %s1011_s8  ;;  %p1017_p13 = scmp.lt.s32.totalorder %s1011_s8, %s1011_s8 }
  0x1d   :  { %p1018_p0 = por %p1017_p13, %p1016_p12 }
  0x1f   :  { %p1019_p1 = pnand %p1018_p0, %p1012_p11 }
  0x21   :  { %1022 = shalt.err (!%p1019_p1)
}
  0x22   :  { %s1055_s0 = smov 384   ;;  %s1056_s9 = smov 24  }
  0x23   :  { %34 = dma.hbm_to_vmem [thread:$0]  %s1155_s1, 6144, %s29_s27, [#allocation6], %s1055_s0, %s1055_s0, %s1056_s9  }
  0x24   :  { %1045 = dma.done.wait [#allocation3], 256  }
  0x25   :  { %1046 = vsyncadd [#allocation3], 4294967040 }
  0x26   :  { %1047 = dma.done.wait [#allocation6], 6144  }
  0x27   :  { %1048 = vsyncadd [#allocation6], 4294961152  ;;  %v143_v0 = vld [vmem:[#allocation5 + $0x8] sm:$0xff]  ;;  %v144_v1 = vld [vmem:[#allocation5 + $0x20] sm:$0xff]  ;;  %v1057_v50 = vmov 0.0   ;;  %vm1058_vm0 = vmmov 0  }
  0x28   :  { %v45_v2 = vld [vmem:[#allocation5] sm:$0xff]  ;;  %v898_v3 = vpack.c.bf16 %v144_v1, %v143_v0  ;;  %v46_v4 = vld [vmem:[#allocation5 + $0x18] sm:$0xff]  ;;  %v146_v6 = vld [vmem:[#allocation5 + $0x50] sm:$0xff]  ;;  %vm479_vm1 = vcmask 64512  }
  0x29   :  { %v145_v5 = vld [vmem:[#allocation5 + $0x38] sm:$0xff]  ;;  %v866_v7 = vpack.c.bf16 %v46_v4, %v45_v2  ;;  %v47_v9 = vld [vmem:[#allocation5 + $0x30] sm:$0xff]  ;;  %v48_v10 = vld [vmem:[#allocation5 + $0x48] sm:$0xff] }
  0x2a   :  { %v902_v8 = vpack.c.bf16 %v146_v6, %v145_v5  ;;  %v147_v11 = vld [vmem:[#allocation5 + $0x68] sm:$0xff]  ;;  %899 = vmatprep.subr.bf16.mxu1 %v898_v3  ;;  %v870_v12 = vpack.c.bf16 %v48_v10, %v47_v9  ;;  %v148_v13 = vld [vmem:[#allocation5 + $0x80] sm:$0xff]  ;;  %v50_v15 = vld [vmem:[#allocation5 + $0x78] sm:$0xff] }
  0x2b   :  { %v49_v14 = vld [vmem:[#allocation5 + $0x60] sm:$0xff]  ;;  %901 = vmatpush3.bf16.msra.mxu1 %v898_v3  ;;  %867 = vmatprep.subr.bf16.mxu0 %v866_v7  ;;  %v906_v16 = vpack.c.bf16 %v148_v13, %v147_v11  ;;  %v149_v18 = vld [vmem:[#allocation5 + $0x98] sm:$0xff]  ;;  %v150_v19 = vld [vmem:[#allocation5 + $0xb0] sm:$0xff] }
  0x2c   :  { %869 = vmatpush3.bf16.msra.mxu0 %v866_v7  ;;  %903 = vmatprep.subr.bf16.mxu1 %v902_v8  ;;  %v874_v17 = vpack.c.bf16 %v50_v15, %v49_v14  ;;  %v51_v20 = vld [vmem:[#allocation5 + $0x90] sm:$0xff]  ;;  %v52_v21 = vld [vmem:[#allocation5 + $0xa8] sm:$0xff]  ;;  %v910_v22 = vpack.c.bf16 %v150_v19, %v149_v18  ;;  %v152_v25 = vld [vmem:[#allocation5 + $0xe0] sm:$0xff] }
  0x2d   :  { %871 = vmatprep.subr.bf16.mxu0 %v870_v12  ;;  %v878_v23 = vpack.c.bf16 %v52_v21, %v51_v20  ;;  %v151_v24 = vld [vmem:[#allocation5 + $0xc8] sm:$0xff]  ;;  %v43_v26 = vld [vmem:[#allocation2] sm:$0xff]  ;;  %v53_v27 = vld [vmem:[#allocation5 + $0xc0] sm:$0xff] }
  0x2e   :  { %v54_v28 = vld [vmem:[#allocation5 + $0xd8] sm:$0xff]  ;;  %808 = vmatprep.mubr.f32.mxu1 %v43_v26  ;;  %773 = vmatprep.mubr.f32.mxu0 %v43_v26  ;;  %v914_v29 = vpack.c.bf16 %v152_v25, %v151_v24  ;;  %v154_v32 = vld [vmem:[#allocation5 + $0x110] sm:$0xff]  ;;  %v56_v34 = vld [vmem:[#allocation5 + $0x108] sm:$0xff] }
  0x2f   :  { %905 = vmatpush3.bf16.msra.mxu1 %v902_v8  ;;  %v882_v30 = vpack.c.bf16 %v54_v28, %v53_v27  ;;  %v153_v31 = vld [vmem:[#allocation5 + $0xf8] sm:$0xff]  ;;  %v55_v33 = vld [vmem:[#allocation5 + $0xf0] sm:$0xff]  ;;  %v155_v37 = vld [vmem:[#allocation5 + $0x128] sm:$0xff] }
  0x30   :  { %873 = vmatpush3.bf16.msra.mxu0 %v870_v12  ;;  %907 = vmatprep.subr.bf16.mxu1 %v906_v16  ;;  %v918_v35 = vpack.c.bf16 %v154_v32, %v153_v31  ;;  %v886_v36 = vpack.c.bf16 %v56_v34, %v55_v33  ;;  %v156_v38 = vld [vmem:[#allocation5 + $0x140] sm:$0xff]  ;;  %v58_v40 = vld [vmem:[#allocation5 + $0x138] sm:$0xff]  ;;  %v158_v44 = vld [vmem:[#allocation5 + $0x170] sm:$0xff] }
  0x31   :  { %875 = vmatprep.subr.bf16.mxu0 %v874_v17  ;;  %v57_v39 = vld [vmem:[#allocation5 + $0x120] sm:$0xff]  ;;  %v922_v41 = vpack.c.bf16 %v156_v38, %v155_v37  ;;  %v157_v43 = vld [vmem:[#allocation5 + $0x158] sm:$0xff]  ;;  %v59_v45 = vld [vmem:[#allocation5 + $0x150] sm:$0xff] }
  0x32   :  { %v890_v42 = vpack.c.bf16 %v58_v40, %v57_v39  ;;  %v60_v46 = vld [vmem:[#allocation5 + $0x168] sm:$0xff]  ;;  %v926_v47 = vpack.c.bf16 %v158_v44, %v157_v43  ;;  %v1107_v49 = vld [vmem:[#allocation2 + $0x8] sm:$0xff]  ;;  %v675_v51 = vld [vmem:[%s1156_s2 + $0x1] ss:$0 sm:$0xff] }
  0x33   :  { %909 = vmatpush3.bf16.msra.mxu1 %v906_v16  ;;  %v894_v48 = vpack.c.bf16 %v60_v46, %v59_v45  ;;  %v674_v53 = vld [vmem:[%s1156_s2] ss:$0 sm:$0xff]  ;;  %v242_v62 = vld [vmem:[#allocation5 + $0x28] sm:$0xff]  ;;  %v243_v63 = vld [vmem:[#allocation5 + $0x40] sm:$0xff] }
  0x34   :  { %877 = vmatpush3.bf16.msra.mxu0 %v874_v17  ;;  %911 = vmatprep.subr.bf16.mxu1 %v910_v22  ;;  %v241_v61 = vld [vmem:[#allocation5 + $0x10] sm:$0xff]  ;;  %v244_v1 = vld [vmem:[#allocation5 + $0x58] sm:$0xff]  ;;  %v246_v4 = vld [vmem:[#allocation5 + $0x88] sm:$0xff] }
  0x35   :  { %879 = vmatprep.subr.bf16.mxu0 %v878_v23  ;;  %v930_v0 = vpack.c.bf16 %v242_v62, %v241_v61  ;;  %v934_v2 = vpack.c.bf16 %v244_v1, %v243_v63  ;;  %v245_v3 = vld [vmem:[#allocation5 + $0x70] sm:$0xff]  ;;  %v247_v6 = vld [vmem:[#allocation5 + $0xa0] sm:$0xff]  ;;  %v248_v7 = vld [vmem:[#allocation5 + $0xb8] sm:$0xff] }
  0x36   :  { %v938_v5 = vpack.c.bf16 %v246_v4, %v245_v3  ;;  %v942_v8 = vpack.c.bf16 %v248_v7, %v247_v6  ;;  %v249_v9 = vld [vmem:[#allocation5 + $0xd0] sm:$0xff]  ;;  %v250_v10 = vld [vmem:[#allocation5 + $0xe8] sm:$0xff]  ;;  %v251_v12 = vld [vmem:[#allocation5 + $0x100] sm:$0xff] }
  0x37   :  { %913 = vmatpush3.bf16.msra.mxu1 %v910_v22  ;;  %v946_v11 = vpack.c.bf16 %v250_v10, %v249_v9  ;;  %v252_v13 = vld [vmem:[#allocation5 + $0x118] sm:$0xff]  ;;  %v253_v15 = vld [vmem:[#allocation5 + $0x130] sm:$0xff]  ;;  %v254_v16 = vld [vmem:[#allocation5 + $0x148] sm:$0xff] }
  0x38   :  { %881 = vmatpush3.bf16.msra.mxu0 %v878_v23  ;;  %915 = vmatprep.subr.bf16.mxu1 %v914_v29  ;;  %v950_v14 = vpack.c.bf16 %v252_v13, %v251_v12  ;;  %v954_v17 = vpack.c.bf16 %v254_v16, %v253_v15  ;;  %v255_v18 = vld [vmem:[#allocation5 + $0x160] sm:$0xff]  ;;  %v256_v19 = vld [vmem:[#allocation5 + $0x178] sm:$0xff]  ;;  %v676_v38 = vld [vmem:[%s1156_s2 + $0x2] ss:$0 sm:$0xff]  ;;  %s1059_s2 = smov [#allocation7]  }
  0x39   :  { %883 = vmatprep.subr.bf16.mxu0 %v882_v30  ;;  %v958_v20 = vpack.c.bf16 %v256_v19, %v255_v18  ;;  %s661_s17 = sshll.u32 %s1059_s2, 4  ;;  %s662_s17 = int_to_ptr.vmem [resolvable:$true] %s661_s17 }
  0x3a   :  { %s1023_s18 = scalar_lea.vmem %s662_s17, 256  ;;  %p1028_p3 = scmp.lt.s32.totalorder %s662_s17, %s662_s17 }
  0x3b   :  { %917 = vmatpush3.bf16.msra.mxu1 %v914_v29  ;;  %p1024_p2 = scmp.ne.s32.totalorder %s662_s17, %s1023_s18  ;;  %p1029_p4 = scmp.lt.s32.totalorder %s1023_s18, %s1023_s18 }
  0x3c   :  { %885 = vmatpush3.bf16.msra.mxu0 %v882_v30  ;;  %919 = vmatprep.subr.bf16.mxu1 %v918_v35 }
  0x3d   :  { %887 = vmatprep.subr.bf16.mxu0 %v886_v36  ;;  %p1030_p5 = por %p1029_p4, %p1028_p3 }
  0x3f   :  { %921 = vmatpush3.bf16.msra.mxu1 %v918_v35  ;;  %p1031_p6 = pnand %p1030_p5, %p1024_p2 }
  0x40   :  { %889 = vmatpush3.bf16.msra.mxu0 %v886_v36  ;;  %923 = vmatprep.subr.bf16.mxu1 %v922_v41 }
  0x41   :  { %891 = vmatprep.subr.bf16.mxu0 %v890_v42 }
  0x43   :  { %925 = vmatpush3.bf16.msra.mxu1 %v922_v41 }
  0x44   :  { %893 = vmatpush3.bf16.msra.mxu0 %v890_v42  ;;  %927 = vmatprep.subr.bf16.mxu1 %v926_v47 }
  0x45   :  { %895 = vmatprep.subr.bf16.mxu0 %v894_v48 }
  0x47   :  { %929 = vmatpush3.bf16.msra.mxu1 %v926_v47 }
  0x48   :  { %897 = vmatpush3.bf16.msra.mxu0 %v894_v48  ;;  %846 = vmatprep.subr.mxu1 %v1057_v50 }
  0x49   :  { %931 = vmatprep.subr.bf16.mxu0 %v930_v0 }
  0x4a   :  { %809 = vmatmul.mubr.f32.vlgmr.msra.gmra.mrb[0].mxu1 %v1107_v49 }
  0x4b   :  { %774 = vmatmul.mubr.f32.vlgmr.msra.gmra.mrb[0].mxu0 %v1107_v49  ;;  %848 = vmatprep.mubr.msk.f32.mxu1 %vm1058_vm0, %v1057_v50 }
  0x4c   :  { %843 = vmatprep.mubr.f32.mxu0 %v43_v26  ;;  %933 = vmatpush3.bf16.msra.mxu0 %v930_v0 }
  0x4d   :  { %935 = vmatprep.subr.bf16.mxu0 %v934_v2 }
  0x50   :  { %937 = vmatpush3.bf16.msra.mxu0 %v934_v2 }
  0x51   :  { %939 = vmatprep.subr.bf16.mxu0 %v938_v5 }
  0x54   :  { %941 = vmatpush3.bf16.msra.mxu0 %v938_v5 }
  0x55   :  { %943 = vmatprep.subr.bf16.mxu0 %v942_v8 }
  0x58   :  { %945 = vmatpush3.bf16.msra.mxu0 %v942_v8 }
  0x59   :  { %947 = vmatprep.subr.bf16.mxu0 %v946_v11 }
  0x5c   :  { %949 = vmatpush3.bf16.msra.mxu0 %v946_v11 }
  0x5d   :  { %951 = vmatprep.subr.bf16.mxu0 %v950_v14 }
  0x60   :  { %953 = vmatpush3.bf16.msra.mxu0 %v950_v14 }
  0x61   :  { %955 = vmatprep.subr.bf16.mxu0 %v954_v17 }
  0x64   :  { %957 = vmatpush3.bf16.msra.mxu0 %v954_v17 }
  0x65   :  { %959 = vmatprep.subr.bf16.mxu0 %v958_v20 }
  0x68   :  { %961 = vmatpush3.bf16.msra.mxu0 %v958_v20 }
  0x6b   :  { %844 = vmatmul.mubr.f32.vlgmr.msra.gmra.mrb[2].mxu0 %v1107_v49 }
 0x11d   :  { %v810_v52 = vpop.f32.mrb[0].mxu1 }
 0x11e   :  { %v232_v54 = vpop.f32.mrb[1].mxu1  ;;  %v775_v55 = vpop.f32.mrb[0].mxu0  ;;  %v238_v59 = vadd.f32 %v810_v52, %v675_v51 }
 0x11f   :  { %v233_v56 = vadd.f32 %v675_v51, %v232_v54  ;;  %v134_v57 = vpop.f32.mrb[1].mxu0  ;;  %v140_v60 = vadd.f32 %v775_v55, %v674_v53 }
 0x120   :  { %v135_v58 = vadd.f32 %v674_v53, %v134_v57 }
 0x121   :  { %847 = vmatpush3.xpose.msra.mxu1 %v233_v56 }
 0x122   :  { %851 = vmatprep.subr.mxu1 %v1057_v50 }
 0x124   :  { %849 = vmatmul.mubr.f32.vlgmr.msra.gmra.mrb[2].mxu1 %v135_v58 }
 0x125   :  { %852 = vmatpush3.xpose.msra.mxu1 %v238_v59  ;;  %853 = vmatprep.mubr.msk.f32.mxu1 %vm1058_vm0, %v1057_v50 }
 0x126   :  { %856 = vmatprep.subr.mxu1 %v1057_v50 }
 0x128   :  { %854 = vmatmul.mubr.f32.vlgmr.msra.gmra.mrb[4].mxu1 %v140_v60 }
 0x129   :  { %858 = vmatprep.mubr.msk.f32.mxu1 %vm1058_vm0, %v1057_v50 }
 0x13e   :  { %v845_v37 = vpop.f32.mrb[2].mxu0 }
 0x13f   :  { %v330_v39 = vpop.f32.mrb[3].mxu0  ;;  %v336_v40 = vadd.f32 %v845_v37, %v676_v38 }
 0x140   :  { %v331_v41 = vadd.f32 %v676_v38, %v330_v39 }
 0x142   :  { %857 = vmatpush3.msra.mxu1 %v331_v41 }
 0x143   :  { %861 = vmatprep.subr.mxu1 %v1057_v50 }
 0x1f7   :  { %v405_v21 = vpop.f32.mrb[2].mxu1 }
 0x1f8   :  { %v850_v22 = vpop.f32.mrb[3].mxu1  ;;  %v480_v23 = vsel %vm479_vm1, %v405_v21, -inf }
 0x1f9   :  { %481 = vmax.xlane.f32.xlu0 %v480_v23 }
 0x1fb   :  { %v475_v24 = vpop.f32.mrb[4].mxu1 }
 0x1fc   :  { %v855_v25 = vpop.f32.mrb[5].mxu1  ;;  %v483_v26 = vsel %vm479_vm1, %v475_v24, -inf }
 0x1fd   :  { %484 = vmax.xlane.f32.xlu0 %v483_v26 }
 0x286   :  { %v482_v27 = vpop.xlane.xlu0 %481 }
 0x287   :  { %v486_v28 = vsub.f32 %v405_v21, %v482_v27 }
 0x289   :  { %v488_v29 = vmul.f32 1.442695, %v486_v28 }
 0x28a   :  { %v485_v30 = vpop.xlane.xlu0 %484 }
 0x28b   :  { %971 = vpow2.f32 %v488_v29  ;;  %v487_v31 = vsub.f32 %v475_v24, %v485_v30 }
 0x28d   :  { %v490_v32 = vmul.f32 1.442695, %v487_v31 }
 0x28f   :  { %973 = vpow2.f32 %v490_v32 }
 0x295   :  { %v972_v33 = vpop.eup %971 }
 0x296   :  { %v492_v34 = vsel %vm479_vm1, %v972_v33, 0.0 }
 0x297   :  { %493 = vadd.xlane.f32.xlu1 %v492_v34 }
 0x299   :  { %v974_v35 = vpop.eup %973 }
 0x29a   :  { %v495_v36 = vsel %vm479_vm1, %v974_v35, 0.0 }
 0x29b   :  { %496 = vadd.xlane.f32.xlu1 %v495_v36 }
 0x324   :  { %v494_v42 = vpop.xlane.xlu1 %493 }
 0x325   :  { %975 = vrcp.f32 %v494_v42 }
 0x328   :  { %v497_v43 = vpop.xlane.xlu1 %496 }
 0x329   :  { %977 = vrcp.f32 %v497_v43 }
 0x32f   :  { %v976_v44 = vpop.eup %975 }
 0x330   :  { %v500_v45 = vmul.f32 %v976_v44, %v494_v42 }
 0x332   :  { %v502_v46 = vsub.f32 2.0, %v500_v45 }
 0x333   :  { %v978_v47 = vpop.eup %977 }
 0x334   :  { %v504_v48 = vmul.f32 %v976_v44, %v502_v46  ;;  %v501_v49 = vmul.f32 %v978_v47, %v497_v43 }
 0x336   :  { %v506_v51 = vmul.f32 %v972_v33, %v504_v48  ;;  %v503_v52 = vsub.f32 2.0, %v501_v49 }
 0x338   :  { %v505_v53 = vmul.f32 %v978_v47, %v503_v52  ;;  %859 = vmatmul.mubr.msk.f32.vlgmr.msra.gmra.mrb[6].mxu1 %vm479_vm1, %v506_v51 }
 0x339   :  { %862 = vmatpush3.msra.mxu1 %v336_v40  ;;  %863 = vmatprep.mubr.msk.f32.mxu1 %vm1058_vm0, %v1057_v50 }
 0x33a   :  { %v507_v54 = vmul.f32 %v974_v35, %v505_v53 }
 0x33c   :  { %864 = vmatmul.mubr.msk.f32.vlgmr.msra.gmra.mrb[8].mxu1 %vm479_vm1, %v507_v54 }
 0x40b   :  { %v577_v55 = vpop.f32.mrb[6].mxu1 }
 0x40c   :  { %654 = vst [vmem:[#allocation7] sm:$0xff] %v577_v55  ;;  %v860_v56 = vpop.f32.mrb[7].mxu1 }
 0x40f   :  { %v650_v57 = vpop.f32.mrb[8].mxu1 }
 0x410   :  { %655 = vst [vmem:[#allocation7 + $0x8] sm:$0xff] %v650_v57  ;;  %v865_v58 = vpop.f32.mrb[9].mxu1 }
 0x411   :  { %1034 = shalt.err (!%p1031_p6)
}
 0x412   :  { %s1035_s21 = scalar_lea.hbm %s1157_s3, 256 }
 0x413   :  { %p1036_p7 = scmp.ne.s32.totalorder %s1157_s3, %s1035_s21  ;;  %p1039_p8 = scmp.lt.u32.totalorder %s1035_s21, %s1157_s3 }
 0x415   :  { %p1041_p9 = pnand %p1039_p8, %p1036_p7 }
 0x417   :  { %1044 = shalt.err (!%p1041_p9)
}
 0x418   :  { %667 = dma.vmem_to_hbm [thread:$0]  %s662_s17, 256, %s1157_s3, [#allocation4], %s1052_s22, %s1052_s22, %s1053_s23  }
 0x419   :  { %1049 = dma.done.wait [#allocation4], 256  }
 0x41a   :  { %1050 = vsyncadd [#allocation4], 4294967040 }
 0x41b   :  { %671 = vsyncpa [#allocation3], 1 }
 0x41c   :  { %672 = vsyncpa [#allocation6], 1 }
 0x41d   :  { %673 = vsyncpa [#allocation4], 1 }

// kernel: tpu_custom_call.1
= control target key start
LH: loop header
LB: loop body
LE: loop exit
PB: predicated region body
PF: predicated region fallthrough
CT: control target
= control target key end

     0   :  { %8 = vsyncpa [#allocation3], 0  ;;  %s1154_s0 = inlined_call_operand.hbm [shape: f32[2,8,128], index: 0, kind: input, shape index: {}]   ;;  %s1155_s1 = inlined_call_operand.hbm [shape: f32[128,384], index: 1, kind: input, shape index: {}]   ;;  %s1156_s2 = inlined_call_operand.vmem [shape: f32[1,384], index: 2, kind: input, shape index: {}]   ;;  %s1157_s3 = inlined_call_operand.hbm [shape: f32[2,8,128], index: 3, kind: output, shape index: {}]  }
   0x1   :  { %9 = vsyncpa [#allocation6], 0 }
   0x2   :  { %10 = vsyncpa [#allocation4], 0  ;;  %s1051_s12 = smov [#allocation2]   ;;  %s979_s16 = scalar_lea.hbm %s1154_s0, 256 }
   0x3   :  { %s16_s13 = sshll.u32 %s1051_s12, 4  ;;  %p980_p0 = scmp.ne.s32.totalorder %s1154_s0, %s979_s16  ;;  %s17_s13 = int_to_ptr.vmem [resolvable:$true] %s16_s13 }
   0x4   :  { %p983_p1 = scmp.lt.u32.totalorder %s979_s16, %s1154_s0 }
   0x6   :  { %p985_p2 = pnand %p983_p1, %p980_p0 }
   0x8   :  { %988 = shalt.err (!%p985_p2)
}
   0x9   :  { %s989_s21 = scalar_lea.vmem %s17_s13, 256  ;;  %p994_p4 = scmp.lt.s32.totalorder %s17_s13, %s17_s13 }
   0xa   :  { %p990_p3 = scmp.ne.s32.totalorder %s17_s13, %s989_s21  ;;  %p995_p5 = scmp.lt.s32.totalorder %s989_s21, %s989_s21 }
   0xc   :  { %p996_p6 = por %p995_p5, %p994_p4 }
   0xe   :  { %p997_p7 = pnand %p996_p6, %p990_p3 }
  0x10   :  { %1000 = shalt.err (!%p997_p7)
}
  0x11   :  { %s1052_s22 = smov 128   ;;  %s1053_s23 = smov 8  }
  0x12   :  { %22 = dma.hbm_to_vmem [thread:$0]  %s1154_s0, 256, %s17_s13, [#allocation3], %s1052_s22, %s1052_s22, %s1053_s23  }
  0x13   :  { %s1054_s26 = smov [#allocation5]   ;;  %s1001_s30 = scalar_lea.hbm %s1155_s1, 6144 }
  0x14   :  { %s28_s27 = sshll.u32 %s1054_s26, 4  ;;  %p1002_p8 = scmp.ne.s32.totalorder %s1155_s1, %s1001_s30  ;;  %s29_s27 = int_to_ptr.vmem [resolvable:$true] %s28_s27 }
  0x15   :  { %p1005_p9 = scmp.lt.u32.totalorder %s1001_s30, %s1155_s1 }
  0x17   :  { %p1007_p10 = pnand %p1005_p9, %p1002_p8 }
  0x19   :  { %1010 = shalt.err (!%p1007_p10)
}
  0x1a   :  { %s1011_s8 = scalar_lea.vmem %s29_s27, 6144  ;;  %p1016_p12 = scmp.lt.s32.totalorder %s29_s27, %s29_s27 }
  0x1b   :  { %p1012_p11 = scmp.ne.s32.totalorder %s29_s27, %s1011_s8  ;;  %p1017_p13 = scmp.lt.s32.totalorder %s1011_s8, %s1011_s8 }
  0x1d   :  { %p1018_p0 = por %p1017_p13, %p1016_p12 }
  0x1f   :  { %p1019_p1 = pnand %p1018_p0, %p1012_p11 }
  0x21   :  { %1022 = shalt.err (!%p1019_p1)
}
  0x22   :  { %s1055_s0 = smov 384   ;;  %s1056_s9 = smov 24  }
  0x23   :  { %34 = dma.hbm_to_vmem [thread:$0]  %s1155_s1, 6144, %s29_s27, [#allocation6], %s1055_s0, %s1055_s0, %s1056_s9  }
  0x24   :  { %1045 = dma.done.wait [#allocation3], 256  }
  0x25   :  { %1046 = vsyncadd [#allocation3], 4294967040 }
  0x26   :  { %1047 = dma.done.wait [#allocation6], 6144  }
  0x27   :  { %1048 = vsyncadd [#allocation6], 4294961152  ;;  %v143_v0 = vld [vmem:[#allocation5 + $0x8] sm:$0xff]  ;;  %v144_v1 = vld [vmem:[#allocation5 + $0x20] sm:$0xff]  ;;  %v1057_v50 = vmov 0.0   ;;  %vm1058_vm0 = vmmov 0  }
  0x28   :  { %v45_v2 = vld [vmem:[#allocation5] sm:$0xff]  ;;  %v898_v3 = vpack.c.bf16 %v144_v1, %v143_v0  ;;  %v46_v4 = vld [vmem:[#allocation5 + $0x18] sm:$0xff]  ;;  %v146_v6 = vld [vmem:[#allocation5 + $0x50] sm:$0xff]  ;;  %vm479_vm1 = vcmask 64512  }
  0x29   :  { %v145_v5 = vld [vmem:[#allocation5 + $0x38] sm:$0xff]  ;;  %v866_v7 = vpack.c.bf16 %v46_v4, %v45_v2  ;;  %v47_v9 = vld [vmem:[#allocation5 + $0x30] sm:$0xff]  ;;  %v48_v10 = vld [vmem:[#allocation5 + $0x48] sm:$0xff] }
  0x2a   :  { %v902_v8 = vpack.c.bf16 %v146_v6, %v145_v5  ;;  %v147_v11 = vld [vmem:[#allocation5 + $0x68] sm:$0xff]  ;;  %899 = vmatprep.subr.bf16.mxu1 %v898_v3  ;;  %v870_v12 = vpack.c.bf16 %v48_v10, %v47_v9  ;;  %v148_v13 = vld [vmem:[#allocation5 + $0x80] sm:$0xff]  ;;  %v50_v15 = vld [vmem:[#allocation5 + $0x78] sm:$0xff] }
  0x2b   :  { %v49_v14 = vld [vmem:[#allocation5 + $0x60] sm:$0xff]  ;;  %901 = vmatpush3.bf16.msra.mxu1 %v898_v3  ;;  %867 = vmatprep.subr.bf16.mxu0 %v866_v7  ;;  %v906_v16 = vpack.c.bf16 %v148_v13, %v147_v11  ;;  %v149_v18 = vld [vmem:[#allocation5 + $0x98] sm:$0xff]  ;;  %v150_v19 = vld [vmem:[#allocation5 + $0xb0] sm:$0xff] }
  0x2c   :  { %869 = vmatpush3.bf16.msra.mxu0 %v866_v7  ;;  %903 = vmatprep.subr.bf16.mxu1 %v902_v8  ;;  %v874_v17 = vpack.c.bf16 %v50_v15, %v49_v14  ;;  %v51_v20 = vld [vmem:[#allocation5 + $0x90] sm:$0xff]  ;;  %v52_v21 = vld [vmem:[#allocation5 + $0xa8] sm:$0xff]  ;;  %v910_v22 = vpack.c.bf16 %v150_v19, %v149_v18  ;;  %v152_v25 = vld [vmem:[#allocation5 + $0xe0] sm:$0xff] }
  0x2d   :  { %871 = vmatprep.subr.bf16.mxu0 %v870_v12  ;;  %v878_v23 = vpack.c.bf16 %v52_v21, %v51_v20  ;;  %v151_v24 = vld [vmem:[#allocation5 + $0xc8] sm:$0xff]  ;;  %v43_v26 = vld [vmem:[#allocation2] sm:$0xff]  ;;  %v53_v27 = vld [vmem:[#allocation5 + $0xc0] sm:$0xff] }
  0x2e   :  { %v54_v28 = vld [vmem:[#allocation5 + $0xd8] sm:$0xff]  ;;  %808 = vmatprep.mubr.f32.mxu1 %v43_v26  ;;  %773 = vmatprep.mubr.f32.mxu0 %v43_v26  ;;  %v914_v29 = vpack.c.bf16 %v152_v25, %v151_v24  ;;  %v154_v32 = vld [vmem:[#allocation5 + $0x110] sm:$0xff]  ;;  %v56_v34 = vld [vmem:[#allocation5 + $0x108] sm:$0xff] }
  0x2f   :  { %905 = vmatpush3.bf16.msra.mxu1 %v902_v8  ;;  %v882_v30 = vpack.c.bf16 %v54_v28, %v53_v27  ;;  %v153_v31 = vld [vmem:[#allocation5 + $0xf8] sm:$0xff]  ;;  %v55_v33 = vld [vmem:[#allocation5 + $0xf0] sm:$0xff]  ;;  %v155_v37 = vld [vmem:[#allocation5 + $0x128] sm:$0xff] }
  0x30   :  { %873 = vmatpush3.bf16.msra.mxu0 %v870_v12  ;;  %907 = vmatprep.subr.bf16.mxu1 %v906_v16  ;;  %v918_v35 = vpack.c.bf16 %v154_v32, %v153_v31  ;;  %v886_v36 = vpack.c.bf16 %v56_v34, %v55_v33  ;;  %v156_v38 = vld [vmem:[#allocation5 + $0x140] sm:$0xff]  ;;  %v58_v40 = vld [vmem:[#allocation5 + $0x138] sm:$0xff]  ;;  %v158_v44 = vld [vmem:[#allocation5 + $0x170] sm:$0xff] }
  0x31   :  { %875 = vmatprep.subr.bf16.mxu0 %v874_v17  ;;  %v57_v39 = vld [vmem:[#allocation5 + $0x120] sm:$0xff]  ;;  %v922_v41 = vpack.c.bf16 %v156_v38, %v155_v37  ;;  %v157_v43 = vld [vmem:[#allocation5 + $0x158] sm:$0xff]  ;;  %v59_v45 = vld [vmem:[#allocation5 + $0x150] sm:$0xff] }
  0x32   :  { %v890_v42 = vpack.c.bf16 %v58_v40, %v57_v39  ;;  %v60_v46 = vld [vmem:[#allocation5 + $0x168] sm:$0xff]  ;;  %v926_v47 = vpack.c.bf16 %v158_v44, %v157_v43  ;;  %v1107_v49 = vld [vmem:[#allocation2 + $0x8] sm:$0xff]  ;;  %v675_v51 = vld [vmem:[%s1156_s2 + $0x1] ss:$0 sm:$0xff] }
  0x33   :  { %909 = vmatpush3.bf16.msra.mxu1 %v906_v16  ;;  %v894_v48 = vpack.c.bf16 %v60_v46, %v59_v45  ;;  %v674_v53 = vld [vmem:[%s1156_s2] ss:$0 sm:$0xff]  ;;  %v242_v62 = vld [vmem:[#allocation5 + $0x28] sm:$0xff]  ;;  %v243_v63 = vld [vmem:[#allocation5 + $0x40] sm:$0xff] }
  0x34   :  { %877 = vmatpush3.bf16.msra.mxu0 %v874_v17  ;;  %911 = vmatprep.subr.bf16.mxu1 %v910_v22  ;;  %v241_v61 = vld [vmem:[#allocation5 + $0x10] sm:$0xff]  ;;  %v244_v1 = vld [vmem:[#allocation5 + $0x58] sm:$0xff]  ;;  %v246_v4 = vld [vmem:[#allocation5 + $0x88] sm:$0xff] }
  0x35   :  { %879 = vmatprep.subr.bf16.mxu0 %v878_v23  ;;  %v930_v0 = vpack.c.bf16 %v242_v62, %v241_v61  ;;  %v934_v2 = vpack.c.bf16 %v244_v1, %v243_v63  ;;  %v245_v3 = vld [vmem:[#allocation5 + $0x70] sm:$0xff]  ;;  %v247_v6 = vld [vmem:[#allocation5 + $0xa0] sm:$0xff]  ;;  %v248_v7 = vld [vmem:[#allocation5 + $0xb8] sm:$0xff] }
  0x36   :  { %v938_v5 = vpack.c.bf16 %v246_v4, %v245_v3  ;;  %v942_v8 = vpack.c.bf16 %v248_v7, %v247_v6  ;;  %v249_v9 = vld [vmem:[#allocation5 + $0xd0] sm:$0xff]  ;;  %v250_v10 = vld [vmem:[#allocation5 + $0xe8] sm:$0xff]  ;;  %v251_v12 = vld [vmem:[#allocation5 + $0x100] sm:$0xff] }
  0x37   :  { %913 = vmatpush3.bf16.msra.mxu1 %v910_v22  ;;  %v946_v11 = vpack.c.bf16 %v250_v10, %v249_v9  ;;  %v252_v13 = vld [vmem:[#allocation5 + $0x118] sm:$0xff]  ;;  %v253_v15 = vld [vmem:[#allocation5 + $0x130] sm:$0xff]  ;;  %v254_v16 = vld [vmem:[#allocation5 + $0x148] sm:$0xff] }
  0x38   :  { %881 = vmatpush3.bf16.msra.mxu0 %v878_v23  ;;  %915 = vmatprep.subr.bf16.mxu1 %v914_v29  ;;  %v950_v14 = vpack.c.bf16 %v252_v13, %v251_v12  ;;  %v954_v17 = vpack.c.bf16 %v254_v16, %v253_v15  ;;  %v255_v18 = vld [vmem:[#allocation5 + $0x160] sm:$0xff]  ;;  %v256_v19 = vld [vmem:[#allocation5 + $0x178] sm:$0xff]  ;;  %v676_v38 = vld [vmem:[%s1156_s2 + $0x2] ss:$0 sm:$0xff]  ;;  %s1059_s2 = smov [#allocation7]  }
  0x39   :  { %883 = vmatprep.subr.bf16.mxu0 %v882_v30  ;;  %v958_v20 = vpack.c.bf16 %v256_v19, %v255_v18  ;;  %s661_s17 = sshll.u32 %s1059_s2, 4  ;;  %s662_s17 = int_to_ptr.vmem [resolvable:$true] %s661_s17 }
  0x3a   :  { %s1023_s18 = scalar_lea.vmem %s662_s17, 256  ;;  %p1028_p3 = scmp.lt.s32.totalorder %s662_s17, %s662_s17 }
  0x3b   :  { %917 = vmatpush3.bf16.msra.mxu1 %v914_v29  ;;  %p1024_p2 = scmp.ne.s32.totalorder %s662_s17, %s1023_s18  ;;  %p1029_p4 = scmp.lt.s32.totalorder %s1023_s18, %s1023_s18 }
  0x3c   :  { %885 = vmatpush3.bf16.msra.mxu0 %v882_v30  ;;  %919 = vmatprep.subr.bf16.mxu1 %v918_v35 }
  0x3d   :  { %887 = vmatprep.subr.bf16.mxu0 %v886_v36  ;;  %p1030_p5 = por %p1029_p4, %p1028_p3 }
  0x3f   :  { %921 = vmatpush3.bf16.msra.mxu1 %v918_v35  ;;  %p1031_p6 = pnand %p1030_p5, %p1024_p2 }
  0x40   :  { %889 = vmatpush3.bf16.msra.mxu0 %v886_v36  ;;  %923 = vmatprep.subr.bf16.mxu1 %v922_v41 }
  0x41   :  { %891 = vmatprep.subr.bf16.mxu0 %v890_v42 }
  0x43   :  { %925 = vmatpush3.bf16.msra.mxu1 %v922_v41 }
  0x44   :  { %893 = vmatpush3.bf16.msra.mxu0 %v890_v42  ;;  %927 = vmatprep.subr.bf16.mxu1 %v926_v47 }
  0x45   :  { %895 = vmatprep.subr.bf16.mxu0 %v894_v48 }
  0x47   :  { %929 = vmatpush3.bf16.msra.mxu1 %v926_v47 }
  0x48   :  { %897 = vmatpush3.bf16.msra.mxu0 %v894_v48  ;;  %846 = vmatprep.subr.mxu1 %v1057_v50 }
  0x49   :  { %931 = vmatprep.subr.bf16.mxu0 %v930_v0 }
  0x4a   :  { %809 = vmatmul.mubr.f32.vlgmr.msra.gmra.mrb[0].mxu1 %v1107_v49 }
  0x4b   :  { %774 = vmatmul.mubr.f32.vlgmr.msra.gmra.mrb[0].mxu0 %v1107_v49  ;;  %848 = vmatprep.mubr.msk.f32.mxu1 %vm1058_vm0, %v1057_v50 }
  0x4c   :  { %843 = vmatprep.mubr.f32.mxu0 %v43_v26  ;;  %933 = vmatpush3.bf16.msra.mxu0 %v930_v0 }
  0x4d   :  { %935 = vmatprep.subr.bf16.mxu0 %v934_v2 }
  0x50   :  { %937 = vmatpush3.bf16.msra.mxu0 %v934_v2 }
  0x51   :  { %939 = vmatprep.subr.bf16.mxu0 %v938_v5 }
  0x54   :  { %941 = vmatpush3.bf16.msra.mxu0 %v938_v5 }
  0x55   :  { %943 = vmatprep.subr.bf16.mxu0 %v942_v8 }
  0x58   :  { %945 = vmatpush3.bf16.msra.mxu0 %v942_v8 }
  0x59   :  { %947 = vmatprep.subr.bf16.mxu0 %v946_v11 }
  0x5c   :  { %949 = vmatpush3.bf16.msra.mxu0 %v946_v11 }
  0x5d   :  { %951 = vmatprep.subr.bf16.mxu0 %v950_v14 }
  0x60   :  { %953 = vmatpush3.bf16.msra.mxu0 %v950_v14 }
  0x61   :  { %955 = vmatprep.subr.bf16.mxu0 %v954_v17 }
  0x64   :  { %957 = vmatpush3.bf16.msra.mxu0 %v954_v17 }
  0x65   :  { %959 = vmatprep.subr.bf16.mxu0 %v958_v20 }
  0x68   :  { %961 = vmatpush3.bf16.msra.mxu0 %v958_v20 }
  0x6b   :  { %844 = vmatmul.mubr.f32.vlgmr.msra.gmra.mrb[2].mxu0 %v1107_v49 }
 0x11d   :  { %v810_v52 = vpop.f32.mrb[0].mxu1 }
 0x11e   :  { %v232_v54 = vpop.f32.mrb[1].mxu1  ;;  %v775_v55 = vpop.f32.mrb[0].mxu0  ;;  %v238_v59 = vadd.f32 %v810_v52, %v675_v51 }
 0x11f   :  { %v233_v56 = vadd.f32 %v675_v51, %v232_v54  ;;  %v134_v57 = vpop.f32.mrb[1].mxu0  ;;  %v140_v60 = vadd.f32 %v775_v55, %v674_v53 }
 0x120   :  { %v135_v58 = vadd.f32 %v674_v53, %v134_v57 }
 0x121   :  { %847 = vmatpush3.xpose.msra.mxu1 %v233_v56 }
 0x122   :  { %851 = vmatprep.subr.mxu1 %v1057_v50 }
 0x124   :  { %849 = vmatmul.mubr.f32.vlgmr.msra.gmra.mrb[2].mxu1 %v135_v58 }
 0x125   :  { %852 = vmatpush3.xpose.msra.mxu1 %v238_v59  ;;  %853 = vmatprep.mubr.msk.f32.mxu1 %vm1058_vm0, %v1057_v50 }
 0x126   :  { %856 = vmatprep.subr.mxu1 %v1057_v50 }
 0x128   :  { %854 = vmatmul.mubr.f32.vlgmr.msra.gmra.mrb[4].mxu1 %v140_v60 }
 0x129   :  { %858 = vmatprep.mubr.msk.f32.mxu1 %vm1058_vm0, %v1057_v50 }
 0x13e   :  { %v845_v37 = vpop.f32.mrb[2].mxu0 }
 0x13f   :  { %v330_v39 = vpop.f32.mrb[3].mxu0  ;;  %v336_v40 = vadd.f32 %v845_v37, %v676_v38 }
 0x140   :  { %v331_v41 = vadd.f32 %v676_v38, %v330_v39 }
 0x142   :  { %857 = vmatpush3.msra.mxu1 %v331_v41 }
 0x143   :  { %861 = vmatprep.subr.mxu1 %v1057_v50 }
 0x1f7   :  { %v405_v21 = vpop.f32.mrb[2].mxu1 }
 0x1f8   :  { %v850_v22 = vpop.f32.mrb[3].mxu1  ;;  %v480_v23 = vsel %vm479_vm1, %v405_v21, -inf }
 0x1f9   :  { %481 = vmax.xlane.f32.xlu0 %v480_v23 }
 0x1fb   :  { %v475_v24 = vpop.f32.mrb[4].mxu1 }
 0x1fc   :  { %v855_v25 = vpop.f32.mrb[5].mxu1  ;;  %v483_v26 = vsel %vm479_vm1, %v475_v24, -inf }
 0x1fd   :  { %484 = vmax.xlane.f32.xlu0 %v483_v26 }
 0x286   :  { %v482_v27 = vpop.xlane.xlu0 %481 }
 0x287   :  { %v486_v28 = vsub.f32 %v405_v21, %v482_v27 }
 0x289   :  { %v488_v29 = vmul.f32 1.442695, %v486_v28 }
 0x28a   :  { %v485_v30 = vpop.xlane.xlu0 %484 }
 0x28b   :  { %971 = vpow2.f32 %v488_v29  ;;  %v487_v31 = vsub.f32 %v475_v24, %v485_v30 }
 0x28d   :  { %v490_v32 = vmul.f32 1.442695, %v487_v31 }
 0x28f   :  { %973 = vpow2.f32 %v490_v32 }
 0x295   :  { %v972_v33 = vpop.eup %971 }
 0x296   :  { %v492_v34 = vsel %vm479_vm1, %v972_v33, 0.0 }
 0x297   :  { %493 = vadd.xlane.f32.xlu1 %v492_v34 }
 0x299   :  { %v974_v35 = vpop.eup %973 }
 0x29a   :  { %v495_v36 = vsel %vm479_vm1, %v974_v35, 0.0 }
 0x29b   :  { %496 = vadd.xlane.f32.xlu1 %v495_v36 }
 0x324   :  { %v494_v42 = vpop.xlane.xlu1 %493 }
 0x325   :  { %975 = vrcp.f32 %v494_v42 }
 0x328   :  { %v497_v43 = vpop.xlane.xlu1 %496 }
 0x329   :  { %977 = vrcp.f32 %v497_v43 }
 0x32f   :  { %v976_v44 = vpop.eup %975 }
 0x330   :  { %v500_v45 = vmul.f32 %v976_v44, %v494_v42 }
 0x332   :  { %v502_v46 = vsub.f32 2.0, %v500_v45 }
 0x333   :  { %v978_v47 = vpop.eup %977 }
 0x334   :  { %v504_v48 = vmul.f32 %v976_v44, %v502_v46  ;;  %v501_v49 = vmul.f32 %v978_v47, %v497_v43 }
 0x336   :  { %v506_v51 = vmul.f32 %v972_v33, %v504_v48  ;;  %v503_v52 = vsub.f32 2.0, %v501_v49 }
 0x338   :  { %v505_v53 = vmul.f32 %v978_v47, %v503_v52  ;;  %859 = vmatmul.mubr.msk.f32.vlgmr.msra.gmra.mrb[6].mxu1 %vm479_vm1, %v506_v51 }
 0x339   :  { %862 = vmatpush3.msra.mxu1 %v336_v40  ;;  %863 = vmatprep.mubr.msk.f32.mxu1 %vm1058_vm0, %v1057_v50 }
 0x33a   :  { %v507_v54 = vmul.f32 %v974_v35, %v505_v53 }
 0x33c   :  { %864 = vmatmul.mubr.msk.f32.vlgmr.msra.gmra.mrb[8].mxu1 %vm479_vm1, %v507_v54 }
 0x40b   :  { %v577_v55 = vpop.f32.mrb[6].mxu1 }
 0x40c   :  { %654 = vst [vmem:[#allocation7] sm:$0xff] %v577_v55  ;;  %v860_v56 = vpop.f32.mrb[7].mxu1 }
 0x40f   :  { %v650_v57 = vpop.f32.mrb[8].mxu1 }
 0x410   :  { %655 = vst [vmem:[#allocation7 + $0x8] sm:$0xff] %v650_v57  ;;  %v865_v58 = vpop.f32.mrb[9].mxu1 }
 0x411   :  { %1034 = shalt.err (!%p1031_p6)
}
 0x412   :  { %s1035_s21 = scalar_lea.hbm %s1157_s3, 256 }
 0x413   :  { %p1036_p7 = scmp.ne.s32.totalorder %s1157_s3, %s1035_s21  ;;  %p1039_p8 = scmp.lt.u32.totalorder %s1035_s21, %s1157_s3 }
 0x415   :  { %p1041_p9 = pnand %p1039_p8, %p1036_p7 }
 0x417   :  { %1044 = shalt.err (!%p1041_p9)
}
 0x418   :  { %667 = dma.vmem_to_hbm [thread:$0]  %s662_s17, 256, %s1157_s3, [#allocation4], %s1052_s22, %s1052_s22, %s1053_s23  }
 0x419   :  { %1049 = dma.done.wait [#allocation4], 256  }
 0x41a   :  { %1050 = vsyncadd [#allocation4], 4294967040 }
 0x41b   :  { %671 = vsyncpa [#allocation3], 1 }
 0x41c   :  { %672 = vsyncpa [#allocation6], 1 }
 0x41d   :  { %673 = vsyncpa [#allocation4], 1 }

</bundles_post_ra>
